<compile_context>
chip_gen: v7x
topology: tpu7x:2x2x1
jax: 0.10.0
libtpu: 0.0.40
codegen_flags: <defaults>
</compile_context>

<pallas_src>
import math

import jax
import jax.numpy as jnp
from jax.experimental import pallas as pl
from jax.experimental.pallas import tpu as pltpu

_VMEM_LIMIT = 32 * 1024 * 1024          # safe on v5e / v6e / v7x
_TILE_BUDGET = 6 * 1024 * 1024          # double-buffered per-block byte budget


def _pick_point_tile(n, bytes_per_point):
    """Largest lane-dense (multiple-of-128) tile along the point axis that
    keeps double-buffered blocks under _TILE_BUDGET; small extents use the
    full dimension (block dim == array dim is always legal)."""
    if n <= 256:
        return n
    cap = _TILE_BUDGET // max(bytes_per_point, 1)
    cap = max(128, min(2048, (cap // 128) * 128))
    return n if n <= cap else cap


# ----------------------------------------------------------------------------
# pre_conv: Conv1d(k=1) + ReLU over [B, C_in, N], lane-dense N tiles
# ----------------------------------------------------------------------------
def _preconv_kernel(x_ref, w_ref, b_ref, o_ref):
    # x: (C_in, TN)  w: (Cp, C_in)  b: (Cp, 1)  o: (Cp, TN)
    y = jnp.dot(w_ref[...], x_ref[...], preferred_element_type=jnp.float32)
    y = y + b_ref[...]
    o_ref[...] = jnp.maximum(y, 0.0).astype(o_ref.dtype)


def pre_conv_pallas(x, w, b):
    """x: [B, C_in, N] -> [B, Cp, N]  (conv1x1 + ReLU)."""
    B, C_in, N = x.shape
    Cp = w.shape[0]
    bytes_per_point = (C_in + Cp) * 4 * 2          # in + out, double-buffered
    tn = _pick_point_tile(N, bytes_per_point)
    return pl.pallas_call(
        _preconv_kernel,
        out_shape=jax.ShapeDtypeStruct((B, Cp, N), x.dtype),
        grid=(B, pl.cdiv(N, tn)),
        in_specs=[
            pl.BlockSpec((None, C_in, tn), lambda bi, ni: (bi, 0, ni)),
            pl.BlockSpec((Cp, C_in), lambda bi, ni: (0, 0)),
            pl.BlockSpec((Cp, 1), lambda bi, ni: (0, 0)),
        ],
        out_specs=pl.BlockSpec((None, Cp, tn), lambda bi, ni: (bi, 0, ni)),
        compiler_params=pltpu.CompilerParams(
            dimension_semantics=("parallel", "parallel"),
            vmem_limit_bytes=_VMEM_LIMIT),
    )(x, w, b)


# ----------------------------------------------------------------------------
# ASSA anisotropic multiply + max reduction + post_conv (conv1x1 + ReLU), fused
# ----------------------------------------------------------------------------
def _assa_reduce_postconv_kernel(nf_ref, rp_ref, w_ref, b_ref, o_ref):
    # nf: (Cp, nsample, TNP)   grouped neighborhood features (npoint on lanes)
    # rp: (3,  nsample, TNP)   relative positions
    # w : (3, C_out, Cp)       post conv1x1 weight, split over the xyz axis
    # b : (C_out, 1)
    # o : (C_out, TNP)
    nf = nf_ref[...]
    rp = rp_ref[...]
    # torch: (nf.unsqueeze(1) * rp.unsqueeze(2)).view(B, 3*Cp, npoint, nsample)
    #        -> max over nsample -> Conv1d(3*Cp -> C_out, k=1) -> ReLU.
    # The 3*Cp contraction becomes three accumulated K=Cp MXU dots on
    # lane-dense (Cp, TNP) operands; the nsample max is a cheap sublane reduce.
    # TODO(synk): collapse into a single K=3*Cp dot once sublane-unaligned
    #             jnp.concatenate (Cp=4 rows) lowering is verified on Mosaic.
    acc = None
    for k in range(3):
        prod = nf * rp[k][None, :, :]            # (Cp, nsample, TNP), VPU
        red = jnp.max(prod, axis=1)              # max over nsample (sublanes)
        part = jnp.dot(w_ref[k], red, preferred_element_type=jnp.float32)
        acc = part if acc is None else acc + part
    o_ref[...] = jnp.maximum(acc + b_ref[...], 0.0).astype(o_ref.dtype)


def assa_reduce_post_conv_pallas(nf, rp, w3, b):
    """nf: [B, Cp, nsample, npoint], rp: [B, 3, nsample, npoint]
       w3: [3, C_out, Cp], b: [C_out, 1]  ->  [B, C_out, npoint]."""
    B, Cp, nsample, npoint = nf.shape
    C_out = w3.shape[1]
    bytes_per_point = (Cp + 3) * nsample * 4 * 2 + C_out * 4 * 2
    tnp = _pick_point_tile(npoint, bytes_per_point)
    return pl.pallas_call(
        _assa_reduce_postconv_kernel,
        out_shape=jax.ShapeDtypeStruct((B, C_out, npoint), nf.dtype),
        grid=(B, pl.cdiv(npoint, tnp)),
        in_specs=[
            pl.BlockSpec((None, Cp, nsample, tnp), lambda bi, ni: (bi, 0, 0, ni)),
            pl.BlockSpec((None, 3, nsample, tnp), lambda bi, ni: (bi, 0, 0, ni)),
            pl.BlockSpec((3, C_out, Cp), lambda bi, ni: (0, 0, 0)),
            pl.BlockSpec((C_out, 1), lambda bi, ni: (0, 0)),
        ],
        out_specs=pl.BlockSpec((None, C_out, tnp), lambda bi, ni: (bi, 0, ni)),
        compiler_params=pltpu.CompilerParams(
            dimension_semantics=("parallel", "parallel"),
            vmem_limit_bytes=_VMEM_LIMIT),
    )(nf, rp, w3, b)


# ----------------------------------------------------------------------------
# Grouper (ball query) — glue in plain JAX, emits the [B, C, nsample, npoint]
# layout (npoint last -> lane-dense blocks for the ASSA kernel).
# TODO(synk): fuse this gather into the ASSA kernel (feats are only Cp
#             channels, so the full [Cp, N] slab fits VMEM at real sizes) to
#             avoid materializing nf/rp — the largest tensors — in HBM.
# ----------------------------------------------------------------------------
def ball_query_group(query_xyz, support_xyz, features, radius, nsample):
    """query_xyz: [B, npoint, 3], support_xyz: [B, N, 3], features: [B, C, N]
       -> nf [B, C, nsample, npoint], rp [B, 3, nsample, npoint]."""
    B, N, _ = support_xyz.shape
    d2 = jnp.sum(
        (query_xyz[:, :, None, :] - support_xyz[:, None, :, :]) ** 2, axis=-1
    )  # [B, npoint, N]
    within = d2 <= radius * radius
    key = jnp.where(within, jnp.arange(N)[None, None, :], N)
    order = jnp.argsort(key, axis=-1)            # stable: in-radius indices first
    idx = order[..., :nsample]                   # first nsample in-radius indices
    valid = jnp.take_along_axis(key, idx, axis=-1) < N
    idx = jnp.where(valid, idx, idx[..., :1])    # pad with first entry (pointnet2)

    idx_t = jnp.swapaxes(idx, 1, 2)                              # [B, ns, npoint]
    nf = jax.vmap(lambda f, i: f[:, i])(features, idx_t)         # [B, C, ns, np]
    gx = jax.vmap(lambda s, i: s[i])(support_xyz, idx_t)         # [B, ns, np, 3]
    rp = gx - query_xyz[:, None, :, :]                           # [B, ns, np, 3]
    rp = jnp.transpose(rp, (0, 3, 1, 2))                         # [B, 3, ns, np]
    return nf, rp


# ----------------------------------------------------------------------------
# PreConv forward
# ----------------------------------------------------------------------------
def preconv_forward(query_xyz, support_xyz, features, query_mask, support_mask,
                    params, radius, nsample, query_idx=None):
    del query_mask, support_mask, query_idx  # unused (ball_query, no residuals)
    w_pre, b_pre, w_post, b_post = params
    # pre_conv (conv1x1 + ReLU) — Pallas
    feats = pre_conv_pallas(features, w_pre, b_pre)
    # grouper — plain JAX glue (data-dependent neighbor gather)
    nf, rp = ball_query_group(query_xyz, support_xyz, feats, radius, nsample)
    # anisotropic multiply + max reduction + post_conv (conv1x1 + ReLU) — fused
    C_out = w_post.shape[0]
    Cp = w_pre.shape[0]
    # torch channel order after view(B, 3*Cp, ...) is k-major, c-minor.
    w3 = jnp.transpose(w_post.reshape(C_out, 3, Cp), (1, 0, 2))  # [3, C_out, Cp]
    return assa_reduce_post_conv_pallas(nf, rp, w3, b_post)


# ----------------------------------------------------------------------------
# Pure-JAX reference (mirrors the torch forward semantics)
# ----------------------------------------------------------------------------
def preconv_reference(query_xyz, support_xyz, features, params, radius, nsample):
    w_pre, b_pre, w_post, b_post = params
    f = jnp.maximum(
        jnp.einsum("oc,bcn->bon", w_pre, features) + b_pre[None, :, :], 0.0)
    nf, rp = ball_query_group(query_xyz, support_xyz, f, radius, nsample)
    # nf: [B, Cp, ns, np], rp: [B, 3, ns, np]
    B, Cp, ns, npnt = nf.shape
    prod = nf[:, None, :, :, :] * rp[:, :, None, :, :]     # [B, 3, Cp, ns, np]
    red = jnp.max(prod, axis=3).reshape(B, 3 * Cp, npnt)   # k-major, c-minor
    out = jnp.maximum(
        jnp.einsum("oc,bcn->bon", w_post, red) + b_post[None, :, :], 0.0)
    return out


# ----------------------------------------------------------------------------
if __name__ == "__main__":
    # Small shapes consistent with the module:
    #   channels=[4, 12, 32], post_layers=1 -> pre channels [4, 12];
    #   feature_type='assa' -> Cp = ceil(12/3) = 4;
    #   post_channel_in = 3*Cp = 12, post channels [12, 32].
    B, N, npoint = 2, 16, 16
    C_in, C_mid, C_out = 4, 12, 32
    Cp = int(math.ceil(C_mid / 3.0))  # 4
    nsample, radius = 8, 0.35

    key = jax.random.PRNGKey(0)
    k1, k2, k3, k4, k5, k6 = jax.random.split(key, 6)

    support_xyz = jax.random.uniform(k1, (B, N, 3), jnp.float32)
    query_xyz = support_xyz                                 # query == support
    features = jax.random.normal(k2, (B, C_in, N), jnp.float32)
    query_mask = jnp.ones((B, npoint), jnp.bool_)           # unused (ball_query)
    support_mask = jnp.ones((B, N), jnp.bool_)              # unused

    # Deterministic parameters (BN folded into conv weight/bias).
    w_pre = 0.2 * jax.random.normal(k3, (Cp, C_in), jnp.float32)
    b_pre = 0.1 * jax.random.normal(k4, (Cp, 1), jnp.float32)
    w_post = 0.2 * jax.random.normal(k5, (C_out, 3 * Cp), jnp.float32)
    b_post = 0.1 * jax.random.normal(k6, (C_out, 1), jnp.float32)
    params = (w_pre, b_pre, w_post, b_post)

    out = preconv_forward(query_xyz, support_xyz, features, query_mask,
                          support_mask, params, radius, nsample)
    out = jax.block_until_ready(out)

    ref = preconv_reference(query_xyz, support_xyz, features, params,
                            radius, nsample)
    assert out.shape == (B, C_out, npoint), out.shape
    assert jnp.allclose(out, ref, rtol=1e-5, atol=1e-5), "mismatch vs reference"

    print("KERNEL_OK")
</pallas_src>

<mosaic_0001>
module attributes {stable_mosaic.version = 11 : i64} {
  func.func @_preconv_kernel(%arg0: i32, %arg1: i32, %arg2: memref<1x4x16xf32, #tpu.memory_space<vmem>>, %arg3: memref<4x4xf32, #tpu.memory_space<vmem>>, %arg4: memref<4x1xf32, #tpu.memory_space<vmem>>, %arg5: memref<1x4x16xf32, #tpu.memory_space<vmem>>) attributes {dimension_semantics = [#tpu.dimension_semantics<parallel>, #tpu.dimension_semantics<parallel>], iteration_bounds = array<i64: 2, 1>, scalar_prefetch = 0 : i64, scratch_operands = 0 : i64, tpu.core_type = #tpu.core_type<tc>, window_params = [{transform_indices = @transform_0, window_bounds = array<i64: 1, 4, 16>}, {pipeline_mode = #tpu.pipeline_mode<synchronous>, transform_indices = @transform_1, window_bounds = array<i64: 4, 4>}, {pipeline_mode = #tpu.pipeline_mode<synchronous>, transform_indices = @transform_2, window_bounds = array<i64: 4, 1>}, {transform_indices = @transform_3, window_bounds = array<i64: 1, 4, 16>}]} {
    %c0 = arith.constant 0 : index
    %c0_0 = arith.constant 0 : index
    %0 = vector.load %arg3[%c0, %c0_0] : memref<4x4xf32, #tpu.memory_space<vmem>>, vector<4x4xf32>
    %c0_1 = arith.constant 0 : index
    %c0_2 = arith.constant 0 : index
    %c0_3 = arith.constant 0 : index
    %1 = vector.load %arg2[%c0_1, %c0_2, %c0_3] : memref<1x4x16xf32, #tpu.memory_space<vmem>>, vector<1x4x16xf32>
    %2 = vector.shape_cast %1 : vector<1x4x16xf32> to vector<4x16xf32>
    %cst = arith.constant dense<0.000000e+00> : vector<4x16xf32>
    %3 = tpu.matmul %0, %2, %cst {dimension_numbers = #tpu.dot_dimension_numbers<[1], [0], [0], [1], [0, 0, 1, 1], [], []>} : vector<4x4xf32>, vector<4x16xf32>, vector<4x16xf32> -> vector<4x16xf32>
    %c0_4 = arith.constant 0 : index
    %c0_5 = arith.constant 0 : index
    %4 = vector.load %arg4[%c0_4, %c0_5] : memref<4x1xf32, #tpu.memory_space<vmem>>, vector<4x1xf32>
    %5 = vector.broadcast %4 : vector<4x1xf32> to vector<4x16xf32>
    %6 = arith.addf %3, %5 : vector<4x16xf32>
    %cst_6 = arith.constant 0.000000e+00 : f32
    %7 = vector.broadcast %cst_6 : f32 to vector<4x16xf32>
    %8 = arith.maximumf %6, %7 : vector<4x16xf32>
    %c0_7 = arith.constant 0 : index
    %c0_8 = arith.constant 0 : index
    %c0_9 = arith.constant 0 : index
    %9 = vector.load %arg5[%c0_7, %c0_8, %c0_9] : memref<1x4x16xf32, #tpu.memory_space<vmem>>, vector<1x4x16xf32>
    %10 = vector.shape_cast %9 : vector<1x4x16xf32> to vector<4x16xf32>
    %11 = vector.shape_cast %8 : vector<4x16xf32> to vector<1x4x16xf32>
    tpu.vector_store %arg5[%c0_7, %c0_8, %c0_9], %11 {strides = array<i32>} : memref<1x4x16xf32, #tpu.memory_space<vmem>>, vector<1x4x16xf32>,
    return
  }
  func.func @transform_0(%arg0: i32, %arg1: i32) -> (i32, i32, i32) {
    %c0_i32 = arith.constant 0 : i32
    %c0_i32_0 = arith.constant 0 : i32
    return %arg0, %c0_i32, %arg1 : i32, i32, i32
  }
  func.func @transform_1(%arg0: i32, %arg1: i32) -> (i32, i32) {
    %c0_i32 = arith.constant 0 : i32
    %c0_i32_0 = arith.constant 0 : i32
    %c0_i32_1 = arith.constant 0 : i32
    return %c0_i32, %c0_i32_0 : i32, i32
  }
  func.func @transform_2(%arg0: i32, %arg1: i32) -> (i32, i32) {
    %c0_i32 = arith.constant 0 : i32
    %c0_i32_0 = arith.constant 0 : i32
    %c0_i32_1 = arith.constant 0 : i32
    return %c0_i32, %c0_i32_0 : i32, i32
  }
  func.func @transform_3(%arg0: i32, %arg1: i32) -> (i32, i32, i32) {
    %c0_i32 = arith.constant 0 : i32
    %c0_i32_0 = arith.constant 0 : i32
    return %arg0, %c0_i32, %arg1 : i32, i32, i32
  }
}

</mosaic_0001>

<bundles_post_ra>
// kernel: tpu_custom_call.1
= control target key start
LH: loop header
LB: loop body
LE: loop exit
PB: predicated region body
PF: predicated region fallthrough
CT: control target
= control target key end

     0   :  { %8 = vsyncpa [#allocation3], 0  ;;  %s792_s0 = inlined_call_operand.hbm [shape: f32[2,4,16], index: 0, kind: input, shape index: {}]   ;;  %s793_s1 = inlined_call_operand.vmem [shape: f32[4,4], index: 1, kind: input, shape index: {}]   ;;  %s794_s2 = inlined_call_operand.vmem [shape: f32[4,1], index: 2, kind: input, shape index: {}]   ;;  %s795_s3 = inlined_call_operand.hbm [shape: f32[2,4,16], index: 3, kind: output, shape index: {}]  }
   0x1   :  { %10 = vsyncpa [#allocation3 + $0x1], 0 }
   0x2   :  { %11 = vsyncpa [#allocation4], 0 }
   0x3   :  { %13 = vsyncpa [#allocation4 + $0x1], 0  ;;  %s614_s12 = smov 0   ;;  %s616_s13 = smov 0  }
   0x4   :  { %s618_s14 = smov 0   ;;  %s620_s15 = smov 0  }
   0x5   :  { %s622_s16 = smov 0   ;;  %s624_s17 = smov 0  }
   0x6 LB: > { %s387_s18 = sadd.s32 4294967295, %s587_s17   ;;  %s388_s19 = sadd.s32 4294967294, %s587_s17   ;;  %s587_s17 = sphi %s624_s17, %s19_s17   ;;  %s583_s16 = sphi %s622_s16, %s811_s16   ;;  %s579_s15 = sphi %s620_s15, %s810_s15   ;;  %s575_s14 = sphi %s618_s14, %s809_s14   ;;  %s571_s13 = sphi %s616_s13, %s808_s13   ;;  %s567_s12 = sphi %s614_s12, %s807_s12  }
   0x7   : > { %s31_s20 = sadd.s32 1, %s583_s16  ;;  %s40_s21 = sadd.s32 1, %s575_s14 }
   0x8   : > { %p33_p0 = scmp.ge.s32.totalorder %s31_s20, 2  ;;  %p47_p1 = scmp.ne.s32.totalorder %s575_s14, %s571_s13 }
   0x9   : > { %p48_p2 = scmp.eq.s32.totalorder %s587_s17, 0  ;;  %p53_p3 = scmp.ne.s32.totalorder %s571_s13, %s567_s12 }
   0xa   : > { %s813_s20 = smov (%p33_p0, %s31_s20), 0  ;;  %p54_p5 = scmp.eq.s32.totalorder %s387_s18, 0 }
   0xb   : > { %p655_p4 = por %p48_p2, %p47_p1  ;;  %s35_s23 = ssub.s32 %s583_s16, %s813_s20 }
   0xc   : > { %p121_p6 = scmp.eq.s32.totalorder %s387_s18, 1  ;;  %p38_p7 = scmp.eq.s32.totalorder %s35_s23, 0 }
   0xd   : > { %p661_p8 = por %p54_p5, %p53_p3  ;;  %p127_p10 = scmp.eq.s32.totalorder %s388_s19, 1 }
   0xe   : > { %p665_p9 = por %p121_p6, %p47_p1  ;;  %p421_p13 = scmp.lt.s32.totalorder %s587_s17, 2 }
   0xf   : > { %s670_s26 = scalar_select %p38_p7, %s575_s14, %s40_s21  }
  0x10   : > { %s799_s25 = scalar_select %p665_p9, 1, 0 }
  0x11   : > { %p672_p11 = por %p127_p10, %p53_p3  ;;  %s153_s28 = sand.u32 1, %s575_s14  }
  0x12   : > { %s391_s29 = sshll.u32 %s153_s28, 2  ;;  %s392_s30 = sshll.u32 %s583_s16, 6 }
  0x13   : > { %s800_s27 = scalar_select %p672_p11, 1, 0 }
  0x14   : > { %s683_s6 = scalar_lea.hbm %s792_s0, %s392_s30  ;;  %s157_s7 = scalar_lea.vmem [#allocation2], %s391_s29 }
  0x15   : > { %s165_s8 = sshll.u32 %s157_s7, 4  ;;  %p689_p0 = pnand %p421_p13, %p655_p4  ;;  %s685_s8 = int_to_ptr.vmem [resolvable:$true] %s165_s8 }
  0x16   : > { %s154_s10 = scalar_lea.sflag [#allocation3], %s153_s28  ;;  %s475_s11 = scalar_lea.hbm %s683_s6, 64 }
  0x17   : > { %p476_p3 = scmp.ne.s32.totalorder %s683_s6, %s475_s11  ;;  %p477_p5 = pneg %p689_p0 }
  0x18   : > { %s480_s21 = scalar_lea.hbm %s792_s0, 128  ;;  %p481_p4 = scmp.lt.u32.totalorder %s683_s6, %s792_s0 }
  0x19   : > { %p478_p6 = pnand %p477_p5, %p476_p3  ;;  %p482_p10 = scmp.lt.u32.totalorder %s480_s21, %s475_s11 }
  0x1a   : > { %p484_p12 = scmp.lt.u32.totalorder %s475_s11, %s683_s6 }
  0x1b   : > { %p479_p7 = pneg %p478_p6  ;;  %p483_p13 = por %p482_p10, %p481_p4 }
  0x1d   : > { %p485_p1 = por %p484_p12, %p483_p13 }
  0x1f   : > { %p486_p2 = pnand %p485_p1, %p479_p7 }
  0x21   : > { %489 = shalt.err (!%p486_p2)
}
  0x22   : > { %s490_s28 = scalar_lea.vmem %s685_s8, 64  ;;  %s589_s29 = smov [#allocation2]  }
  0x23   : > { %p491_p3 = scmp.ne.s32.totalorder %s685_s8, %s490_s28  ;;  %s495_s30 = sshll.u32 %s589_s29, 4  ;;  %s496_s30 = int_to_ptr.vmem [resolvable:$false] %s495_s30 }
  0x24   : > { %s497_s4 = scalar_lea.vmem %s496_s30, 128  ;;  %p498_p9 = scmp.lt.s32.totalorder %s685_s8, %s496_s30 }
  0x25   : > { %p493_p6 = pnand %p491_p3, %p477_p5  ;;  %p499_p4 = scmp.lt.s32.totalorder %s497_s4, %s490_s28 }
  0x27   : > { %p494_p11 = pneg %p493_p6  ;;  %p500_p10 = por %p499_p4, %p498_p9 }
  0x29   : > { %p501_p12 = pnand %p500_p10, %p494_p11 }
  0x2b   : > { %504 = shalt.err (!%p501_p12)
}
  0x2c   : > { %416 = dma.hbm_to_vmem [thread:$0]  (!%p689_p0), %s683_s6, 64, %s685_s8, %s154_s10  }
  0x2d   : > { %p802_p1 = scmp.lt.s32.totalorder %s587_s17, 3  ;;  %p803_p2 = scmp.ge.s32.totalorder %s587_s17, 1 }
  0x2f   : > { %p171_p5 = pnand %p803_p2, %p802_p1 }
  0x30   : > { %s725_s5 = sand.u32 (!%p171_p5), 1, %s571_s13  }
  0x31   : > { %174 = sbr.rel (%p171_p5) target bundleno = 290 (0x122), region = 32  ;;  %s394_s7 = sshll.u32 (!%p171_p5), %s725_s5, 2 }
  0x32   : > { %s177_s11 = scalar_lea.sflag (!%p171_p5), [#allocation3], %s725_s5  ;;  %s180_s18 = scalar_lea.vmem (!%p171_p5), [#allocation2], %s394_s7 }
  0x38   : > { %558 = dma.done.wait (%p661_p8), %s177_s11, 64  }
  0x39   : > { %560 = vsyncadd (%p661_p8), %s177_s11, 4294967232  ;;  %v590_v0 = vmov 0.0   ;;  %vm591_vm0 = vmmov 0   ;;  %v592_v1 = vmov 0   ;;  %vm215_vm1 = vcmask 1043456   ;;  %s399_s24 = sshll.u32 %s579_s15, 6 }
  0x3a   : > { %404 = vmatprep.subr.mxu0 %v590_v0  ;;  %406 = vmatprep.mubr.msk.f32.mxu0 %vm591_vm0, %v590_v0  ;;  %vm211_vm2 = vcmask 31744   ;;  %v204_v2 = vld [vmem:[%s180_s18] sm:$0xf]  ;;  %s202_s19 = scalar_lea.vmem [#allocation5], %s394_s7  ;;  %vm290_vm3 = vcmask 125952   ;;  %s743_s28 = scalar_lea.hbm %s795_s3, %s399_s24 }
  0x3b   : > { %474 = vset.pattern.permute.xlu0 %v592_v1  ;;  %v203_v3 = vld [vmem:[%s793_s1] sm:$0xf]  ;;  %405 = vmatpush3.msk.msra.mxu0 %vm215_vm1, %v204_v2  ;;  %s307_s21 = sshll.u32 %s202_s19, 4  ;;  %s293_s29 = scalar_lea.sflag [#allocation4], %s725_s5  ;;  %s745_s21 = int_to_ptr.vmem [resolvable:$true] %s307_s21 }
  0x3c   : > { %v205_v4 = vld [vmem:[%s794_s2] sm:$0xf]  ;;  %407 = vmatmul.mubr.msk.f32.vlgmr.msra.gmra.mrb[0].mxu0 %vm211_vm2, %v203_v3  ;;  %s505_s30 = scalar_lea.vmem %s745_s21, 64  ;;  %p804_p9 = scmp.ne.s32.totalorder %s799_s25, 0 }
  0x3d   : > { %208 = vperm.xlu0 %474, %v205_v4   ;;  %p506_p8 = scmp.ne.s32.totalorder %s745_s21, %s505_s30  ;;  %s593_s15 = smov [#allocation5]  }
  0x3e   : > { %s509_s4 = sshll.u32 %s593_s15, 4  ;;  %s510_s4 = int_to_ptr.vmem [resolvable:$false] %s509_s4 }
  0x3f   : > { %p507_p11 = pnand %p506_p8, %p804_p9  ;;  %s511_s7 = scalar_lea.vmem %s510_s4, 128 }
  0x40   : > { %p512_p7 = scmp.lt.s32.totalorder %s745_s21, %s510_s4  ;;  %p513_p13 = scmp.lt.s32.totalorder %s511_s7, %s505_s30 }
  0x41   : > { %p508_p0 = pneg %p507_p11 }
  0x42   : > { %p514_p3 = por %p513_p13, %p512_p7 }
  0x44   : > { %p515_p6 = pnand %p514_p3, %p508_p0 }
  0xbc   : > { %v209_v5 = vpop.permute.xlu0 %208 }
 0x10f   : > { %v285_v6 = vpop.f32.mrb[0].mxu0 }
 0x110   : > { %v286_v7 = vadd.f32 %v285_v6, %v209_v5  ;;  %v408_v8 = vpop.f32.mrb[1].mxu0 }
 0x112   : > { %v289_v9 = vmax.f32 %v286_v7, 0.0 }
 0x114   : > { %291 = vst.msk [vmem:[%s202_s19] sm:$0xf] %vm290_vm3, %v289_v9 }
 0x115   : > { %518 = shalt.err (!%p515_p6)
}
 0x116   : > { %s519_s5 = scalar_lea.hbm %s743_s28, 64  ;;  %s523_s6 = scalar_lea.hbm %s795_s3, 128 }
 0x117   : > { %p520_p4 = scmp.ne.s32.totalorder %s743_s28, %s519_s5  ;;  %p524_p1 = scmp.lt.u32.totalorder %s743_s28, %s795_s3 }
 0x118   : > { %p525_p2 = scmp.lt.u32.totalorder %s523_s6, %s519_s5  ;;  %p527_p8 = scmp.lt.u32.totalorder %s519_s5, %s743_s28 }
 0x119   : > { %p521_p10 = pnand %p520_p4, %p804_p9 }
 0x11a   : > { %p526_p5 = por %p525_p2, %p524_p1 }
 0x11b   : > { %p522_p12 = pneg %p521_p10 }
 0x11c   : > { %p528_p11 = por %p527_p8, %p526_p5 }
 0x11e   : > { %p529_p0 = pnand %p528_p11, %p522_p12 }
 0x120   : > { %532 = shalt.err (!%p529_p0)
}
 0x121   : > { %411 = dma.vmem_to_hbm [thread:$0]  (%p804_p9), %s745_s21, 64, %s743_s28, %s293_s29  }
 0x122 PF: > { %s319_s10 = sand.u32 1, %s567_s12   ;;  %p805_p7 = scmp.ne.s32.totalorder %s800_s27, 0 }
 0x123   : > { %p806_p13 = scmp.ge.s32.totalorder %s587_s17, 2  ;;  %s320_s24 = scalar_lea.sflag [#allocation4], %s319_s10 }
 0x125   : > { %p418_p3 = pnand %p806_p13, %p805_p7 }
 0x127   : > { %562 = dma.done.wait (!%p418_p3), %s320_s24, 64  }
 0x128   : > { %564 = vsyncadd (!%p418_p3), %s320_s24, 4294967232  ;;  %s19_s17 = sadd.s32 1, %s587_s17   ;;  %s807_s12 = smov %s571_s13 }
 0x129   : > { %p16_p6 = scmp.ge.s32.totalorder %s19_s17, 4   ;;  %s808_s13 = smov %s575_s14 }
 0x12a   : > { %s809_s14 = smov %s670_s26  ;;  %s810_s15 = smov %s583_s16 }
 0x12b   : > { %s811_s16 = smov %s813_s20  ;;  %18 = sbr.rel (!%p16_p6) target bundleno = 6 (0x6), region = 77 }
 0x132   :  { %325 = vsyncpa [#allocation3], 1 }
 0x133   :  { %327 = vsyncpa [#allocation3 + $0x1], 1 }
 0x134   :  { %328 = vsyncpa [#allocation4], 1 }
 0x135   :  { %330 = vsyncpa [#allocation4 + $0x1], 1 }

</bundles_post_ra>
